<compile_context>
chip_gen: v7x
topology: tpu7x:2x2x1
jax: 0.10.0
libtpu: 0.0.40
codegen_flags: <defaults>
</compile_context>

<pallas_src>
import jax
import jax.numpy as jnp
from jax.experimental import pallas as pl
from jax.experimental.pallas import tpu as pltpu

LANE = 128
VMEM_CAP = 48 << 20  # leave headroom under v7x's 64 MiB physical VMEM per TC


def _round_up(v, m):
    return ((v + m - 1) // m) * m


def _pick_tile(n_pad, target):
    """Largest multiple of 128 that divides n_pad and is <= target."""
    t = max(LANE, (min(target, n_pad) // LANE) * LANE)
    while n_pad % t != 0:
        t -= LANE
    return t


def padded_num_nodes(num_nodes, tile=512):
    """Pad node count so row/col tiles never collapse below `tile`."""
    n_pad = _round_up(num_nodes, LANE)
    if n_pad > tile:
        n_pad = _round_up(n_pad, tile)
    return n_pad


# ------------------------------ X @ W kernel ------------------------------


def _xw_kernel(x_ref, w_ref, o_ref):
    o_ref[...] = jnp.dot(
        x_ref[...], w_ref[...], preferred_element_type=jnp.float32
    ).astype(o_ref.dtype)


def dense_xw(x, w, *, out_dtype=jnp.bfloat16, tm_target=512):
    """XW = x @ w, computed once per layer (hoisted out of the A-reduction)."""
    n_pad, fin = x.shape
    fout = w.shape[1]
    tm = _pick_tile(n_pad, tm_target)
    grid = (n_pad // tm,)

    it = jnp.dtype(x.dtype).itemsize
    cost = pl.CostEstimate(
        flops=int(2 * n_pad * fin * fout),
        transcendentals=0,
        bytes_accessed=int(n_pad * fin * it + fin * fout * it
                           + n_pad * fout * jnp.dtype(out_dtype).itemsize),
    )

    return pl.pallas_call(
        _xw_kernel,
        out_shape=jax.ShapeDtypeStruct((n_pad, fout), out_dtype),
        grid=grid,
        in_specs=[
            pl.BlockSpec((tm, fin), lambda i: (i, 0)),
            pl.BlockSpec((fin, fout), lambda i: (0, 0)),
        ],
        out_specs=pl.BlockSpec((tm, fout), lambda i: (i, 0)),
        compiler_params=pltpu.CompilerParams(
            dimension_semantics=("parallel",),
            vmem_limit_bytes=VMEM_CAP,
        ),
        cost_estimate=cost,
    )(x, w)


# --------------------- adjacency aggregation kernel -----------------------


def _make_agg_kernel(apply_relu, use_scratch, xw_resident, tk):
    def kernel(adj_ref, xw_ref, b_ref, out_ref, *scratch):
        acc_ref = scratch[0] if use_scratch else out_ref
        k = pl.program_id(1)

        # Zero accumulator at start of the reduction over adjacency col tiles.
        @pl.when(k == 0)
        def _():
            acc_ref[...] = jnp.zeros_like(acc_ref)

        if xw_resident:
            # Whole XW matrix is VMEM-resident; slice the k-th row block.
            start = pl.multiple_of(k * tk, tk)
            xw_blk = xw_ref[pl.ds(start, tk), :]
        else:
            xw_blk = xw_ref[...]

        acc_ref[...] += jnp.dot(
            adj_ref[...], xw_blk, preferred_element_type=jnp.float32)

        # Finalize (bias + optional ReLU) once, on the last reduction tile.
        @pl.when(k == pl.num_programs(1) - 1)
        def _():
            r = acc_ref[...] + b_ref[...]
            if apply_relu:
                r = jnp.maximum(r, 0.0)
            out_ref[...] = r.astype(out_ref.dtype)

    return kernel


def gcn_aggregate(adj, xw, b, *, apply_relu, out_dtype,
                  tm_target=512, tk_target=2048):
    """out = maybe_relu(adj @ xw + b); all operands already 128-padded."""
    n_pad = adj.shape[0]
    fout = xw.shape[1]

    tm = _pick_tile(n_pad, tm_target)
    tk = _pick_tile(n_pad, tk_target)
    # v7x has 2 TensorCores: keep >= 2 row tiles so the "parallel" axis can
    # actually split across cores (v5e/v6e are single-TC, no harm there).
    if n_pad // tm < 2 and tm >= 2 * LANE:
        tm //= 2
    grid = (n_pad // tm, n_pad // tk)

    it_adj = jnp.dtype(adj.dtype).itemsize
    it_xw = jnp.dtype(xw.dtype).itemsize
    it_o = jnp.dtype(out_dtype).itemsize
    # f32 output accumulates directly in out_ref; bf16 output needs f32 scratch.
    use_scratch = jnp.dtype(out_dtype) != jnp.dtype(jnp.float32)

    adj_bytes = 2 * tm * tk * it_adj                      # double-buffered
    out_bytes = 2 * tm * fout * it_o + (tm * fout * 4 if use_scratch else 0)
    xw_bytes = n_pad * fout * it_xw
    # Keep the whole XW matrix VMEM-resident (constant index_map) when it
    # comfortably fits; otherwise stream (tk, fout) tiles along the reduction.
    xw_resident = (adj_bytes + 2 * xw_bytes + out_bytes) * 2 <= VMEM_CAP

    if xw_resident:
        xw_spec = pl.BlockSpec((n_pad, fout), lambda i, k: (0, 0))
        xw_hbm_bytes = xw_bytes                       # fetched once
        xw_vmem_bytes = 2 * xw_bytes
    else:
        xw_spec = pl.BlockSpec((tk, fout), lambda i, k: (k, 0))
        xw_hbm_bytes = xw_bytes * grid[0]             # re-streamed per row tile
        xw_vmem_bytes = 2 * tk * fout * it_xw

    needed = adj_bytes + out_bytes + xw_vmem_bytes + 2 * fout * 4
    vmem_limit = int(min(max(2 * needed, 8 << 20), VMEM_CAP))

    cost = pl.CostEstimate(
        flops=int(2 * n_pad * n_pad * fout),
        transcendentals=0,
        bytes_accessed=int(n_pad * n_pad * it_adj + xw_hbm_bytes
                           + fout * 4 + n_pad * fout * it_o),
    )

    scratch_shapes = (
        (pltpu.VMEM((tm, fout), jnp.float32),) if use_scratch else ())

    return pl.pallas_call(
        _make_agg_kernel(apply_relu, use_scratch, xw_resident, tk),
        out_shape=jax.ShapeDtypeStruct((n_pad, fout), out_dtype),
        grid=grid,
        in_specs=[
            pl.BlockSpec((tm, tk), lambda i, k: (i, k)),   # adjacency tile
            xw_spec,                                       # XW (resident/stream)
            pl.BlockSpec((1, fout), lambda i, k: (0, 0)),  # bias
        ],
        out_specs=pl.BlockSpec((tm, fout), lambda i, k: (i, 0)),
        scratch_shapes=scratch_shapes,
        compiler_params=pltpu.CompilerParams(
            dimension_semantics=("parallel", "arbitrary"),
            vmem_limit_bytes=vmem_limit,
        ),
        cost_estimate=cost,
    )(adj, xw, b)


# ------------------------------- forward ----------------------------------


def gnn_forward(adj_pad, x, w1, b1, w2, b2):
    """Two-layer GCN: relu(Ahat X W1 + b1), then Ahat H W2 + b2.

    adj_pad: normalized adjacency, already padded to (n_pad, n_pad) and cast
    to bf16 once at graph-build time (so no per-forward pad/cast pass over
    the O(n^2) array).
    """
    n, fin = x.shape
    hid = w1.shape[1]
    fout = w2.shape[1]
    n_pad = adj_pad.shape[0]

    fin_p = _round_up(fin, LANE)
    hid_p = _round_up(hid, LANE)
    fout_p = _round_up(fout, LANE)

    def pad2(a, r, c):
        return jnp.pad(a, ((0, r - a.shape[0]), (0, c - a.shape[1])))

    # bf16 matmul operands (MXU-native on all generations), f32 biases.
    x_p = pad2(x, n_pad, fin_p).astype(jnp.bfloat16)
    w1_p = pad2(w1, fin_p, hid_p).astype(jnp.bfloat16)
    w2_p = pad2(w2, hid_p, fout_p).astype(jnp.bfloat16)
    b1_p = pad2(b1.reshape(1, -1), 1, hid_p).astype(jnp.float32)
    b2_p = pad2(b2.reshape(1, -1), 1, fout_p).astype(jnp.float32)

    # Layer 1: XW computed once (hoisted), then Ahat aggregation + bias + ReLU.
    xw1 = dense_xw(x_p, w1_p, out_dtype=jnp.bfloat16)
    h = gcn_aggregate(adj_pad, xw1, b1_p, apply_relu=True,
                      out_dtype=jnp.bfloat16)

    # Layer 2: same, f32 output accumulated directly in out_ref.
    xw2 = dense_xw(h, w2_p, out_dtype=jnp.bfloat16)
    out = gcn_aggregate(adj_pad, xw2, b2_p, apply_relu=False,
                        out_dtype=jnp.float32)
    return out[:n, :fout]


def build_normalized_adj(edge_index, num_nodes, n_pad):
    """Dense Ahat = D^{-1/2} (A + I) D^{-1/2} from a [2, E] edge_index.

    Returns (padded bf16 copy for the kernels, f32 logical copy for checks).
    Padding + bf16 cast happen ONCE here, at graph-build time.
    """
    adj = jnp.zeros((num_nodes, num_nodes), dtype=jnp.float32)
    if edge_index.shape[1] > 0:
        src, dst = edge_index[0], edge_index[1]
        adj = adj.at[src, dst].set(1.0)
    # Add self-loops without double-counting existing ones (matches PyG's
    # add_remaining_self_loops behaviour for unit edge weights).
    diag = jnp.arange(num_nodes)
    adj = adj.at[diag, diag].set(1.0)
    deg = jnp.sum(adj, axis=1)
    d_inv_sqrt = jnp.where(deg > 0, 1.0 / jnp.sqrt(deg), 0.0)
    adj_hat = d_inv_sqrt[:, None] * adj * d_inv_sqrt[None, :]
    pad = n_pad - num_nodes
    adj_pad = jnp.pad(adj_hat, ((0, pad), (0, pad))).astype(jnp.bfloat16)
    return adj_pad, adj_hat


if __name__ == "__main__":
    # Small, deterministic problem: 8 nodes on a ring graph.
    num_nodes = 8
    input_dim, hidden_dim, output_dim = 16, 32, 8

    # Ring graph edges (both directions), analogous to a torch edge_index [2, E].
    src = jnp.arange(num_nodes, dtype=jnp.int32)
    dst = (src + 1) % num_nodes
    edge_index = jnp.stack(
        [jnp.concatenate([src, dst]), jnp.concatenate([dst, src])], axis=0
    )

    n_pad = padded_num_nodes(num_nodes)
    adj_pad, adj_hat = build_normalized_adj(edge_index, num_nodes, n_pad)

    key = jax.random.PRNGKey(0)
    kx, kw1, kb1, kw2, kb2 = jax.random.split(key, 5)
    x = jax.random.normal(kx, (num_nodes, input_dim), dtype=jnp.float32)

    # GCNConv parameter shapes: W1 [in, hid], b1 [hid]; W2 [hid, out], b2 [out].
    w1 = jax.random.normal(kw1, (input_dim, hidden_dim), dtype=jnp.float32) * (
        1.0 / jnp.sqrt(input_dim)
    )
    b1 = jax.random.normal(kb1, (hidden_dim,), dtype=jnp.float32) * 0.1
    w2 = jax.random.normal(kw2, (hidden_dim, output_dim), dtype=jnp.float32) * (
        1.0 / jnp.sqrt(hidden_dim)
    )
    b2 = jax.random.normal(kb2, (output_dim,), dtype=jnp.float32) * 0.1

    out = gnn_forward(adj_pad, x, w1, b1, w2, b2)
    jax.block_until_ready(out)

    # Pure-JAX f32 reference of the same math (kernels run bf16 matmuls with
    # f32 accumulation, so tolerance is relaxed accordingly).
    ref = adj_hat @ (x @ w1) + b1[None, :]
    ref = jnp.maximum(ref, 0.0)
    ref = adj_hat @ (ref @ w2) + b2[None, :]
    assert out.shape == (num_nodes, output_dim)
    assert jnp.allclose(out, ref, atol=5e-2, rtol=5e-2), "mismatch vs reference"

    print("KERNEL_OK")
</pallas_src>

<mosaic_0001>
module attributes {stable_mosaic.version = 11 : i64} {
  func.func @_xw_kernel(%arg0: i32, %arg1: memref<128x128xbf16, #tpu.memory_space<vmem>>, %arg2: memref<128x128xbf16, #tpu.memory_space<vmem>>, %arg3: memref<128x128xbf16, #tpu.memory_space<vmem>>) attributes {dimension_semantics = [#tpu.dimension_semantics<parallel>], iteration_bounds = array<i64: 1>, scalar_prefetch = 0 : i64, scratch_operands = 0 : i64, tpu.core_type = #tpu.core_type<tc>, window_params = [{transform_indices = @transform_0, window_bounds = array<i64: 128, 128>}, {pipeline_mode = #tpu.pipeline_mode<synchronous>, transform_indices = @transform_1, window_bounds = array<i64: 128, 128>}, {transform_indices = @transform_2, window_bounds = array<i64: 128, 128>}]} {
    %c0 = arith.constant 0 : index
    %c0_0 = arith.constant 0 : index
    %0 = vector.load %arg1[%c0, %c0_0] : memref<128x128xbf16, #tpu.memory_space<vmem>>, vector<128x128xbf16>
    %c0_1 = arith.constant 0 : index
    %c0_2 = arith.constant 0 : index
    %1 = vector.load %arg2[%c0_1, %c0_2] : memref<128x128xbf16, #tpu.memory_space<vmem>>, vector<128x128xbf16>
    %cst = arith.constant dense<0.000000e+00> : vector<128x128xf32>
    %2 = tpu.matmul %0, %1, %cst {dimension_numbers = #tpu.dot_dimension_numbers<[1], [0], [0], [1], [0, 0, 1, 1], [], []>} : vector<128x128xbf16>, vector<128x128xbf16>, vector<128x128xf32> -> vector<128x128xf32>
    %3 = arith.truncf %2 : vector<128x128xf32> to vector<128x128xbf16>
    %c0_3 = arith.constant 0 : index
    %c0_4 = arith.constant 0 : index
    %4 = vector.load %arg3[%c0_3, %c0_4] : memref<128x128xbf16, #tpu.memory_space<vmem>>, vector<128x128xbf16>
    tpu.vector_store %arg3[%c0_3, %c0_4], %3 {strides = array<i32>} : memref<128x128xbf16, #tpu.memory_space<vmem>>, vector<128x128xbf16>,
    return
  }
  func.func @transform_0(%arg0: i32) -> (i32, i32) {
    %c0_i32 = arith.constant 0 : i32
    %c0_i32_0 = arith.constant 0 : i32
    return %arg0, %c0_i32 : i32, i32
  }
  func.func @transform_1(%arg0: i32) -> (i32, i32) {
    %c0_i32 = arith.constant 0 : i32
    %c0_i32_0 = arith.constant 0 : i32
    %c0_i32_1 = arith.constant 0 : i32
    return %c0_i32, %c0_i32_0 : i32, i32
  }
  func.func @transform_2(%arg0: i32) -> (i32, i32) {
    %c0_i32 = arith.constant 0 : i32
    %c0_i32_0 = arith.constant 0 : i32
    return %arg0, %c0_i32 : i32, i32
  }
}

</mosaic_0001>

<bundles_post_ra>
// kernel: tpu_custom_call.1
= control target key start
LH: loop header
LB: loop body
LE: loop exit
PB: predicated region body
PF: predicated region fallthrough
CT: control target
= control target key end

     0   :  { %7 = vsyncpa [#allocation3], 0  ;;  %s681_s0 = inlined_call_operand.hbm [shape: bf16[128,128], index: 0, kind: input, shape index: {}]   ;;  %s682_s1 = inlined_call_operand.hbm [shape: bf16[128,128], index: 1, kind: input, shape index: {}]   ;;  %s683_s2 = inlined_call_operand.hbm [shape: bf16[128,128], index: 2, kind: output, shape index: {}]  }
   0x1   :  { %8 = vsyncpa [#allocation6], 0 }
   0x2   :  { %9 = vsyncpa [#allocation4], 0  ;;  %s616_s9 = smov [#allocation2]   ;;  %s544_s13 = scalar_lea.hbm %s681_s0, 1024 }
   0x3   :  { %s15_s10 = sshll.u32 %s616_s9, 4  ;;  %p545_p0 = scmp.ne.s32.totalorder %s681_s0, %s544_s13  ;;  %s16_s10 = int_to_ptr.vmem [resolvable:$true] %s15_s10 }
   0x4   :  { %p548_p1 = scmp.lt.u32.totalorder %s544_s13, %s681_s0 }
   0x6   :  { %p550_p2 = pnand %p548_p1, %p545_p0 }
   0x8   :  { %553 = shalt.err (!%p550_p2)
}
   0x9   :  { %s554_s18 = scalar_lea.vmem %s16_s10, 1024  ;;  %p559_p4 = scmp.lt.s32.totalorder %s16_s10, %s16_s10 }
   0xa   :  { %p555_p3 = scmp.ne.s32.totalorder %s16_s10, %s554_s18  ;;  %p560_p5 = scmp.lt.s32.totalorder %s554_s18, %s554_s18 }
   0xc   :  { %p561_p6 = por %p560_p5, %p559_p4 }
   0xe   :  { %p562_p7 = pnand %p561_p6, %p555_p3 }
  0x10   :  { %565 = shalt.err (!%p562_p7)
}
  0x11   :  { %s617_s19 = smov 64   ;;  %s618_s20 = smov 4  }
  0x12   :  { %21 = dma.hbm_to_vmem [thread:$0]  %s681_s0, 1024, %s16_s10, [#allocation3], %s617_s19, %s617_s19, %s618_s20  }
  0x13   :  { %s619_s23 = smov [#allocation5]   ;;  %s566_s27 = scalar_lea.hbm %s682_s1, 1024 }
  0x14   :  { %s27_s24 = sshll.u32 %s619_s23, 4  ;;  %p567_p8 = scmp.ne.s32.totalorder %s682_s1, %s566_s27  ;;  %s28_s24 = int_to_ptr.vmem [resolvable:$true] %s27_s24 }
  0x15   :  { %p570_p9 = scmp.lt.u32.totalorder %s566_s27, %s682_s1 }
  0x17   :  { %p572_p10 = pnand %p570_p9, %p567_p8 }
  0x19   :  { %575 = shalt.err (!%p572_p10)
}
  0x1a   :  { %s576_s4 = scalar_lea.vmem %s28_s24, 1024  ;;  %p581_p12 = scmp.lt.s32.totalorder %s28_s24, %s28_s24 }
  0x1b   :  { %p577_p11 = scmp.ne.s32.totalorder %s28_s24, %s576_s4  ;;  %p582_p13 = scmp.lt.s32.totalorder %s576_s4, %s576_s4 }
  0x1d   :  { %p583_p0 = por %p582_p13, %p581_p12 }
  0x1f   :  { %p584_p1 = pnand %p583_p0, %p577_p11 }
  0x21   :  { %587 = shalt.err (!%p584_p1)
}
  0x22   :  { %33 = dma.hbm_to_vmem [thread:$0]  %s682_s1, 1024, %s28_s24, [#allocation6], %s617_s19, %s617_s19, %s618_s20  }
  0x23   :  { %610 = dma.done.wait [#allocation3], 1024  }
  0x24   :  { %611 = vsyncadd [#allocation3], 4294966272 }
  0x25   :  { %612 = dma.done.wait [#allocation6], 1024  }
  0x26   :  { %613 = vsyncadd [#allocation6], 4294966272  ;;  %v528_v0 = vld [vmem:[#allocation5] sm:$0xff]   ;;  %v529_v1 = vld [vmem:[#allocation5 + $0x8] sm:$0xff]   ;;  %s620_s1 = smov [#allocation7]  }
  0x27   :  { %475 = vmatprep.subr.bf16.mxu0 %v528_v0  ;;  %507 = vmatprep.subr.bf16.mxu1 %v528_v0  ;;  %v530_v2 = vld [vmem:[#allocation5 + $0x10] sm:$0xff]   ;;  %v531_v3 = vld [vmem:[#allocation5 + $0x18] sm:$0xff]   ;;  %v536_v4 = vld [vmem:[#allocation2] sm:$0xff]   ;;  %s351_s6 = sshll.u32 %s620_s1, 4  ;;  %s352_s6 = int_to_ptr.vmem [resolvable:$true] %s351_s6 }
  0x28   :  { %476 = vmatpush3.bf16.msra.mxu0 %v528_v0  ;;  %515 = vmatpush3.bf16.msra.mxu1 %v528_v0  ;;  %v537_v5 = vld [vmem:[#allocation2 + $0x20] sm:$0xff]   ;;  %v533_v7 = vld [vmem:[#allocation5 + $0x28] sm:$0xff]   ;;  %v534_v8 = vld [vmem:[#allocation5 + $0x30] sm:$0xff]   ;;  %s588_s7 = scalar_lea.vmem %s352_s6, 1024  ;;  %p593_p3 = scmp.lt.s32.totalorder %s352_s6, %s352_s6 }
  0x29   :  { %477 = vmatprep.subr.bf16.mxu0 %v529_v1  ;;  %508 = vmatprep.subr.bf16.mxu1 %v529_v1  ;;  %v532_v6 = vld [vmem:[#allocation5 + $0x20] sm:$0xff]   ;;  %v535_v9 = vld [vmem:[#allocation5 + $0x38] sm:$0xff]   ;;  %v538_v10 = vld [vmem:[#allocation2 + $0x8] sm:$0xff]   ;;  %p589_p2 = scmp.ne.s32.totalorder %s352_s6, %s588_s7  ;;  %p594_p4 = scmp.lt.s32.totalorder %s588_s7, %s588_s7 }
  0x2a   :  { %491 = vmatprep.mubr.bf16.mxu0 %v536_v4  ;;  %499 = vmatprep.mubr.bf16.mxu1 %v537_v5  ;;  %v539_v11 = vld [vmem:[#allocation2 + $0x28] sm:$0xff]   ;;  %v540_v12 = vld [vmem:[#allocation2 + $0x10] sm:$0xff]   ;;  %v542_v14 = vld [vmem:[#allocation2 + $0x18] sm:$0xff]  }
  0x2b   :  { %v541_v13 = vld [vmem:[#allocation2 + $0x30] sm:$0xff]   ;;  %v543_v15 = vld [vmem:[#allocation2 + $0x38] sm:$0xff]   ;;  %p595_p5 = por %p594_p4, %p593_p3 }
  0x2c   :  { %478 = vmatpush3.bf16.msra.mxu0 %v529_v1  ;;  %516 = vmatpush3.bf16.msra.mxu1 %v529_v1 }
  0x2d   :  { %479 = vmatprep.subr.bf16.mxu0 %v530_v2  ;;  %509 = vmatprep.subr.bf16.mxu1 %v530_v2  ;;  %p596_p6 = pnand %p595_p5, %p589_p2 }
  0x30   :  { %480 = vmatpush3.bf16.msra.mxu0 %v530_v2  ;;  %517 = vmatpush3.bf16.msra.mxu1 %v530_v2 }
  0x31   :  { %481 = vmatprep.subr.bf16.mxu0 %v531_v3  ;;  %510 = vmatprep.subr.bf16.mxu1 %v531_v3 }
  0x34   :  { %482 = vmatpush3.bf16.msra.mxu0 %v531_v3  ;;  %518 = vmatpush3.bf16.msra.mxu1 %v531_v3 }
  0x35   :  { %483 = vmatprep.subr.bf16.mxu0 %v532_v6  ;;  %511 = vmatprep.subr.bf16.mxu1 %v532_v6 }
  0x38   :  { %484 = vmatpush3.bf16.msra.mxu0 %v532_v6  ;;  %519 = vmatpush3.bf16.msra.mxu1 %v532_v6 }
  0x39   :  { %485 = vmatprep.subr.bf16.mxu0 %v533_v7  ;;  %512 = vmatprep.subr.bf16.mxu1 %v533_v7 }
  0x3c   :  { %486 = vmatpush3.bf16.msra.mxu0 %v533_v7  ;;  %520 = vmatpush3.bf16.msra.mxu1 %v533_v7 }
  0x3d   :  { %487 = vmatprep.subr.bf16.mxu0 %v534_v8  ;;  %513 = vmatprep.subr.bf16.mxu1 %v534_v8 }
  0x40   :  { %488 = vmatpush3.bf16.msra.mxu0 %v534_v8  ;;  %521 = vmatpush3.bf16.msra.mxu1 %v534_v8 }
  0x41   :  { %489 = vmatprep.subr.bf16.mxu0 %v535_v9  ;;  %514 = vmatprep.subr.bf16.mxu1 %v535_v9 }
  0x44   :  { %490 = vmatpush3.bf16.msra.mxu0 %v535_v9  ;;  %522 = vmatpush3.bf16.msra.mxu1 %v535_v9 }
  0x47   :  { %492 = vmatmul.mubr.bf16.vlgmr.msra.gmra.mrb[0].mxu0 %v538_v10  ;;  %500 = vmatmul.mubr.bf16.vlgmr.msra.gmra.mrb[0].mxu1 %v539_v11 }
  0x48   :  { %495 = vmatprep.mubr.bf16.mxu0 %v540_v12  ;;  %503 = vmatprep.mubr.bf16.mxu1 %v541_v13 }
  0x4f   :  { %496 = vmatmul.mubr.bf16.gmra.mrb[4].mxu0 %v542_v14  ;;  %504 = vmatmul.mubr.bf16.gmra.mrb[4].mxu1 %v543_v15 }
 0x11a   :  { %v493_v16 = vpop.f32.mrb[0].mxu0  ;;  %v501_v17 = vpop.f32.mrb[0].mxu1 }
 0x11b   :  { %v203_v18 = vpop.f32.mrb[1].mxu0  ;;  %v235_v19 = vpop.f32.mrb[1].mxu1 }
 0x11c   :  { %v494_v20 = vpop.f32.mrb[2].mxu0  ;;  %v502_v21 = vpop.f32.mrb[2].mxu1 }
 0x11d   :  { %v420_v22 = vpack.c.bf16 %v494_v20, %v493_v16  ;;  %v440_v23 = vpack.c.bf16 %v502_v21, %v501_v17  ;;  %v206_v24 = vpop.f32.mrb[3].mxu0  ;;  %v238_v25 = vpop.f32.mrb[3].mxu1 }
 0x11e   :  { %v415_v26 = vpack.c.bf16 %v206_v24, %v203_v18  ;;  %v435_v27 = vpack.c.bf16 %v238_v25, %v235_v19 }
 0x11f   :  { %452 = vst [vmem:[#allocation7 + $0x8] sm:$0xff] %v420_v22   ;;  %456 = vst [vmem:[#allocation7 + $0x28] sm:$0xff] %v440_v23  }
 0x120   :  { %416 = vst [vmem:[#allocation7] sm:$0xff] %v415_v26   ;;  %455 = vst [vmem:[#allocation7 + $0x20] sm:$0xff] %v435_v27  }
 0x122   :  { %v497_v28 = vpop.f32.mrb[4].mxu0  ;;  %v505_v29 = vpop.f32.mrb[4].mxu1 }
 0x123   :  { %v219_v30 = vpop.f32.mrb[5].mxu0  ;;  %v251_v31 = vpop.f32.mrb[5].mxu1 }
 0x124   :  { %v498_v32 = vpop.f32.mrb[6].mxu0  ;;  %v506_v33 = vpop.f32.mrb[6].mxu1 }
 0x125   :  { %v430_v34 = vpack.c.bf16 %v498_v32, %v497_v28  ;;  %v450_v35 = vpack.c.bf16 %v506_v33, %v505_v29  ;;  %v222_v36 = vpop.f32.mrb[7].mxu0  ;;  %v254_v37 = vpop.f32.mrb[7].mxu1 }
 0x126   :  { %v425_v38 = vpack.c.bf16 %v222_v36, %v219_v30  ;;  %v445_v39 = vpack.c.bf16 %v254_v37, %v251_v31 }
 0x127   :  { %454 = vst [vmem:[#allocation7 + $0x18] sm:$0xff] %v430_v34   ;;  %458 = vst [vmem:[#allocation7 + $0x38] sm:$0xff] %v450_v35  }
 0x128   :  { %453 = vst [vmem:[#allocation7 + $0x10] sm:$0xff] %v425_v38   ;;  %457 = vst [vmem:[#allocation7 + $0x30] sm:$0xff] %v445_v39  }
 0x129   :  { %599 = shalt.err (!%p596_p6)
}
 0x12a   :  { %s600_s10 = scalar_lea.hbm %s683_s2, 1024 }
 0x12b   :  { %p601_p7 = scmp.ne.s32.totalorder %s683_s2, %s600_s10  ;;  %p604_p8 = scmp.lt.u32.totalorder %s600_s10, %s683_s2 }
 0x12d   :  { %p606_p9 = pnand %p604_p8, %p601_p7 }
 0x12f   :  { %609 = shalt.err (!%p606_p9)
}
 0x130   :  { %357 = dma.vmem_to_hbm [thread:$0]  %s352_s6, 1024, %s683_s2, [#allocation4], %s617_s19, %s617_s19, %s618_s20  }
 0x131   :  { %614 = dma.done.wait [#allocation4], 1024  }
 0x132   :  { %615 = vsyncadd [#allocation4], 4294966272 }
 0x133   :  { %361 = vsyncpa [#allocation3], 1 }
 0x134   :  { %362 = vsyncpa [#allocation6], 1 }
 0x135   :  { %363 = vsyncpa [#allocation4], 1 }

</bundles_post_ra>
